<compile_context>
chip_gen: v7x
topology: tpu7x:2x2x1
jax: 0.10.0
libtpu: 0.0.40
codegen_flags: <defaults>
</compile_context>

<pallas_src>
import functools

import numpy as np
import jax
import jax.numpy as jnp
from jax.experimental import pallas as pl
from jax.experimental.pallas import tpu as pltpu


# ----------------------------------------------------------------------------
# Host-side precompute: bilinear upsample + 7x7 conv (+ folded BN scale and the
# ChannelPool mean factor) as small dense matrices so the whole forward runs as
# two lane-dense MXU matmuls per batch chunk.
# ----------------------------------------------------------------------------
def _bilinear_matrix(out_size: int, in_size: int) -> np.ndarray:
    """Row-stochastic (out,in) matrix s.t. M @ x == F.interpolate(x) (align_corners=False)."""
    M = np.zeros((out_size, in_size), dtype=np.float32)
    if in_size == 1:
        M[:, 0] = 1.0
        return M
    scale = in_size / out_size
    for i in range(out_size):
        src = max((i + 0.5) * scale - 0.5, 0.0)
        i0 = min(int(np.floor(src)), in_size - 1)
        i1 = min(i0 + 1, in_size - 1)
        w1 = src - i0
        M[i, i0] += 1.0 - w1
        M[i, i1] += w1
    return M


def _upsample_matrix(h, w, H, W) -> np.ndarray:
    """(h*w, H*W) Kronecker matrix: x_flat @ U == bilinear_upsample(x) flattened."""
    return np.kron(_bilinear_matrix(H, h), _bilinear_matrix(W, w)).T


def _conv_matrices(conv_w, H, W):
    """Two (H*W, H*W) matrices so that
         y_flat = mx_flat @ M0 + mn_flat @ M1
       equals the 7x7, pad-3, bias-free conv over the 2-channel (max, mean) stack."""
    wnp = np.asarray(conv_w, dtype=np.float32).reshape(2, 7, 7)
    di = np.arange(H)[:, None] - np.arange(H)[None, :] + 3        # (i, I) -> ky
    dj = np.arange(W)[:, None] - np.arange(W)[None, :] + 3        # (j, J) -> kx
    vi = ((di >= 0) & (di < 7)).astype(np.float32)
    vj = ((dj >= 0) & (dj < 7)).astype(np.float32)
    dic, djc = np.clip(di, 0, 6), np.clip(dj, 0, 6)
    mats = []
    for c in range(2):
        m = wnp[c][dic[:, :, None, None], djc[None, None, :, :]]  # [i, I, j, J]
        m = m * vi[:, :, None, None] * vj[None, None, :, :]
        mats.append(m.transpose(0, 2, 1, 3).reshape(H * W, H * W))
    return mats


# ----------------------------------------------------------------------------
# Pallas kernel: one batch chunk per grid step, pure 2D lane-dense arrays.
# ----------------------------------------------------------------------------
def _spatial_att_refine_kernel(lr_ref,    # (C*Bb, hw)   bf16, channel-major chunk
                               mask_ref,  # (Bb, HW)     f32 hi-res mask
                               lut_ref,   # (C*Bb, HW)   f32, channel-major chunk
                               u_ref,     # (hw, HW)     bf16 Kronecker upsample matrix
                               cc_ref,    # (2*HW, HW)   bf16 [M_max*s ; M_mean*s/(C+1)]
                               bias_ref,  # SMEM (1,)    folded BN bias
                               out_ref,   # (C*Bb, HW)   f32, channel-major chunk
                               *, channels: int):
    Bb = mask_ref.shape[0]

    # 1) Bilinear upsample of the whole chunk: ONE lane-dense MXU matmul
    #    (M = C*Bb rows), bf16 operands, f32 accumulation.
    up = jnp.dot(lr_ref[...], u_ref[...],
                 preferred_element_type=jnp.float32)              # (C*Bb, HW) f32

    # 2) ChannelPool over (channels, mask) for both branches — f32 on the VPU.
    #    Channel planes are 8-row-aligned static slices (views, no relayout).
    mask = mask_ref[...]
    mx_r = mask; sm_r = mask          # rrt branch: pool over (up channels, mask)
    mx_p = mask; sm_p = mask          # ppt branch: pool over (lut channels, mask)
    up_planes, lut_planes = [], []
    for c in range(channels):
        up_c = up[c * Bb:(c + 1) * Bb, :]
        lut_c = lut_ref[c * Bb:(c + 1) * Bb, :]
        up_planes.append(up_c)
        lut_planes.append(lut_c)
        mx_r = jnp.maximum(mx_r, up_c); sm_r = sm_r + up_c
        mx_p = jnp.maximum(mx_p, lut_c); sm_p = sm_p + lut_c

    # 3) Both branches x both conv taps fused into ONE MXU matmul:
    #    LHS rows = [rrt-block ; ppt-block], cols = [max | sum] -> (2*Bb, 2*HW).
    #    BN scale and the 1/(C+1) mean factor are pre-folded into cc_ref.
    lhs = jnp.concatenate(
        [jnp.concatenate([mx_r, sm_r], axis=-1),
         jnp.concatenate([mx_p, sm_p], axis=-1)], axis=0).astype(jnp.bfloat16)
    y = jnp.dot(lhs, cc_ref[...], preferred_element_type=jnp.float32)   # (2*Bb, HW)
    att = jax.nn.sigmoid(y + bias_ref[0])                               # exp on EUP
    rrt = att[:Bb, :]
    ppt = att[Bb:, :]

    # 4) Blend and store once: lane-dense, unmasked full-tile store.
    out = jnp.concatenate(
        [up_planes[c] * rrt + lut_planes[c] * ppt for c in range(channels)], axis=0)
    out_ref[...] = out.astype(out_ref.dtype)


# ----------------------------------------------------------------------------
# Wrapper
# ----------------------------------------------------------------------------
def spatial_att_refine(lr_output, hr_mask, hr_comp=None, extra_feat=None,
                       lut_hr_output=None, target_resolution=(16, 16),
                       *, conv_w=None, bn_scale=None, bn_bias=None,
                       max_block_bytes=8 << 20):
    del hr_comp, extra_feat          # unused by the PyTorch forward as well
    B, C, h, w = lr_output.shape
    H, W = target_resolution
    hw, HW = h * w, H * W

    # Grid sizing: a single step unless per-step activations exceed the VMEM budget
    # (per-step fixed cost ~0.35us dominates tiny problems; a single step also
    # maximizes matmul M).  If splitting, prefer 8-row-aligned batch blocks so the
    # in-kernel channel slices stay sublane-tile aligned.
    per_sample = 4 * (C * (hw + 2 * HW) + 2 * HW)      # ~f32 activation bytes/sample
    B_blk = B
    if B * per_sample > max_block_bytes:
        divs = [d for d in range(1, B + 1)
                if B % d == 0 and d * per_sample <= max_block_bytes]
        aligned = [d for d in divs if d % 8 == 0]
        B_blk = max(aligned) if aligned else (max(divs) if divs else 1)
    num_steps = B // B_blk

    # Constants: BN scale and the ChannelPool 1/(C+1) factor folded into the conv
    # matrices host-side; bf16 operands (f32 MXU accumulation) halve the constant
    # VMEM footprint and run the MXU at its native bf16 rate.  Only the BN bias
    # survives as an SMEM scalar.
    u_mat = jnp.asarray(_upsample_matrix(h, w, H, W), jnp.bfloat16)        # (hw, HW)
    cm_max, cm_mean = _conv_matrices(conv_w, H, W)
    cc_mat = jnp.asarray(
        np.concatenate([cm_max * bn_scale, cm_mean * (bn_scale / (C + 1))], axis=0),
        jnp.bfloat16)                                                      # (2HW, HW)
    bias = jnp.array([bn_bias], jnp.float32)

    # Channel-major chunked layouts (row inside a chunk = c*B_blk + b) so the kernel
    # is pure 2D.  These reshapes/transposes are tiny wrapper-side XLA ops (layout
    # plumbing, not compute).  lr is only a matmul LHS -> ship it bf16.
    lr_cm = (lr_output.reshape(num_steps, B_blk, C, hw)
             .transpose(0, 2, 1, 3).reshape(num_steps, C * B_blk, hw)
             .astype(jnp.bfloat16))
    lut_cm = (lut_hr_output.reshape(num_steps, B_blk, C, HW)
              .transpose(0, 2, 1, 3).reshape(num_steps, C * B_blk, HW)
              .astype(jnp.float32))
    mask_cm = hr_mask.reshape(num_steps, B_blk, HW).astype(jnp.float32)

    # Constant matrices are never re-fetched (constant index_map); single-buffer
    # them when the grid actually has >1 step so they don't double their VMEM
    # footprint as HW grows.  At grid=(1,) this is moot, so we keep the default.
    const_kw = {"pipeline_mode": pl.Buffered(1)} if num_steps > 1 else {}

    out_cm = pl.pallas_call(
        functools.partial(_spatial_att_refine_kernel, channels=C),
        out_shape=jax.ShapeDtypeStruct((num_steps, C * B_blk, HW), jnp.float32),
        grid=(num_steps,),
        in_specs=[
            pl.BlockSpec((None, C * B_blk, hw), lambda b: (b, 0, 0)),
            pl.BlockSpec((None, B_blk, HW), lambda b: (b, 0, 0)),
            pl.BlockSpec((None, C * B_blk, HW), lambda b: (b, 0, 0)),
            pl.BlockSpec((hw, HW), lambda b: (0, 0), **const_kw),
            pl.BlockSpec((2 * HW, HW), lambda b: (0, 0), **const_kw),
            pl.BlockSpec(memory_space=pltpu.MemorySpace.SMEM),
        ],
        out_specs=pl.BlockSpec((None, C * B_blk, HW), lambda b: (b, 0, 0)),
        compiler_params=pltpu.CompilerParams(
            # Independent batch chunks; only engages when >1 step (large B), where
            # it lets v7x's second TensorCore pick up whole chunks.
            dimension_semantics=("parallel",),
        ),
    )(lr_cm, mask_cm, lut_cm, u_mat, cc_mat, bias)

    # TODO(synk): the dense (HW,HW) conv/upsample matrices scale as (H*W)^2 and fit
    # VMEM only for small target resolutions; a banded per-ky formulation with a
    # spatially tiled grid must replace them before scaling to e.g. 1024x1024.
    return (out_cm.reshape(num_steps, C, B_blk, H, W)
            .transpose(0, 2, 1, 3, 4).reshape(B, C, H, W))


# ----------------------------------------------------------------------------
# Pure-JAX reference (same math, standard XLA ops) for a sanity check
# ----------------------------------------------------------------------------
def _reference(lr, mask, lut, conv_w, bn_scale, bn_bias, target_resolution):
    H, W = target_resolution
    h, w = lr.shape[-2:]
    wh = jnp.asarray(_bilinear_matrix(H, h))
    ww = jnp.asarray(_bilinear_matrix(W, w))
    up = jnp.einsum("Hh,bchw,Ww->bcHW", wh, lr, ww)

    def branch(img):
        cat = jnp.concatenate([img, mask], axis=1)
        mx = cat.max(axis=1, keepdims=True)
        mn = cat.mean(axis=1, keepdims=True)
        comp = jnp.concatenate([mx, mn], axis=1)
        y = jax.lax.conv_general_dilated(
            comp, conv_w, window_strides=(1, 1), padding=[(3, 3), (3, 3)],
            dimension_numbers=("NCHW", "OIHW", "NCHW"))
        y = y * bn_scale + bn_bias
        return jax.nn.sigmoid(y)

    return up * branch(up) + lut * branch(lut)


if __name__ == "__main__":
    key = jax.random.PRNGKey(0)
    k1, k2, k3, k4 = jax.random.split(key, 4)

    B, C = 8, 3
    h, w = 8, 8
    H, W = 16, 16                    # target_resolution

    lr_output = jax.random.uniform(k1, (B, C, h, w), jnp.float32)
    hr_mask = (jax.random.uniform(k2, (B, 1, H, W), jnp.float32) > 0.5).astype(jnp.float32)
    lut_hr_output = jax.random.uniform(k3, (B, C, H, W), jnp.float32)

    # BasicConv(2, 1, 7, padding=3, relu=False, bias=False): conv weight only.
    conv_w = jax.random.normal(k4, (1, 2, 7, 7), jnp.float32) * 0.1
    # BatchNorm2d(1) in eval mode with PyTorch-default params, folded to scale/bias.
    gamma, beta, run_mean, run_var, eps = 1.0, 0.0, 0.0, 1.0, 1e-5
    bn_scale = float(gamma / np.sqrt(run_var + eps))
    bn_bias = float(beta - run_mean * gamma / np.sqrt(run_var + eps))

    out = spatial_att_refine(lr_output, hr_mask, None, None, lut_hr_output,
                             target_resolution=(H, W),
                             conv_w=conv_w, bn_scale=bn_scale, bn_bias=bn_bias)
    out = jax.block_until_ready(out)

    ref = _reference(lr_output, hr_mask, lut_hr_output, conv_w,
                     bn_scale, bn_bias, (H, W))
    np.testing.assert_allclose(np.asarray(out), np.asarray(ref), rtol=2e-2, atol=2e-2)

    print("KERNEL_OK")
</pallas_src>

<mosaic_0001>
module attributes {stable_mosaic.version = 11 : i64} {
  func.func @_spatial_att_refine_kernel(%arg0: i32, %arg1: memref<1x24x64xbf16, #tpu.memory_space<vmem>>, %arg2: memref<1x8x256xf32, #tpu.memory_space<vmem>>, %arg3: memref<1x24x256xf32, #tpu.memory_space<vmem>>, %arg4: memref<64x256xbf16, #tpu.memory_space<vmem>>, %arg5: memref<512x256xbf16, #tpu.memory_space<vmem>>, %arg6: memref<1xf32, #tpu.memory_space<smem>>, %arg7: memref<1x24x256xf32, #tpu.memory_space<vmem>>) attributes {dimension_semantics = [#tpu.dimension_semantics<parallel>], iteration_bounds = array<i64: 1>, scalar_prefetch = 0 : i64, scratch_operands = 0 : i64, tpu.core_type = #tpu.core_type<tc>, window_params = [{transform_indices = @transform_0, window_bounds = array<i64: 1, 24, 64>}, {transform_indices = @transform_1, window_bounds = array<i64: 1, 8, 256>}, {transform_indices = @transform_2, window_bounds = array<i64: 1, 24, 256>}, {pipeline_mode = #tpu.pipeline_mode<synchronous>, transform_indices = @transform_3, window_bounds = array<i64: 64, 256>}, {pipeline_mode = #tpu.pipeline_mode<synchronous>, transform_indices = @transform_4, window_bounds = array<i64: 512, 256>}, {transform_indices = @transform_5, window_bounds = array<i64: 1>}, {transform_indices = @transform_6, window_bounds = array<i64: 1, 24, 256>}]} {
    %c0 = arith.constant 0 : index
    %c0_0 = arith.constant 0 : index
    %c0_1 = arith.constant 0 : index
    %0 = vector.load %arg1[%c0, %c0_0, %c0_1] : memref<1x24x64xbf16, #tpu.memory_space<vmem>>, vector<1x24x64xbf16>
    %1 = vector.shape_cast %0 : vector<1x24x64xbf16> to vector<24x64xbf16>
    %c0_2 = arith.constant 0 : index
    %c0_3 = arith.constant 0 : index
    %2 = vector.load %arg4[%c0_2, %c0_3] : memref<64x256xbf16, #tpu.memory_space<vmem>>, vector<64x256xbf16>
    %cst = arith.constant dense<0.000000e+00> : vector<24x256xf32>
    %3 = tpu.matmul %1, %2, %cst {dimension_numbers = #tpu.dot_dimension_numbers<[1], [0], [0], [1], [0, 0, 1, 1], [], []>} : vector<24x64xbf16>, vector<64x256xbf16>, vector<24x256xf32> -> vector<24x256xf32>
    %c0_4 = arith.constant 0 : index
    %c0_5 = arith.constant 0 : index
    %c0_6 = arith.constant 0 : index
    %4 = vector.load %arg2[%c0_4, %c0_5, %c0_6] : memref<1x8x256xf32, #tpu.memory_space<vmem>>, vector<1x8x256xf32>
    %5 = vector.shape_cast %4 : vector<1x8x256xf32> to vector<8x256xf32>
    %6 = vector.extract_strided_slice %3 {offsets = [0, 0], sizes = [8, 256], strides = [1, 1]} : vector<24x256xf32> to vector<8x256xf32>
    %c0_7 = arith.constant 0 : index
    %c0_8 = arith.constant 0 : index
    %c0_9 = arith.constant 0 : index
    %7 = vector.load %arg3[%c0_7, %c0_8, %c0_9] : memref<1x24x256xf32, #tpu.memory_space<vmem>>, vector<1x8x256xf32>
    %8 = vector.shape_cast %7 : vector<1x8x256xf32> to vector<8x256xf32>
    %9 = arith.maximumf %5, %6 : vector<8x256xf32>
    %10 = arith.addf %5, %6 : vector<8x256xf32>
    %11 = arith.maximumf %5, %8 : vector<8x256xf32>
    %12 = arith.addf %5, %8 : vector<8x256xf32>
    %13 = vector.extract_strided_slice %3 {offsets = [8, 0], sizes = [8, 256], strides = [1, 1]} : vector<24x256xf32> to vector<8x256xf32>
    %c0_10 = arith.constant 0 : index
    %c8 = arith.constant 8 : index
    %c0_11 = arith.constant 0 : index
    %14 = vector.load %arg3[%c0_10, %c8, %c0_11] : memref<1x24x256xf32, #tpu.memory_space<vmem>>, vector<1x8x256xf32>
    %15 = vector.shape_cast %14 : vector<1x8x256xf32> to vector<8x256xf32>
    %16 = arith.maximumf %9, %13 : vector<8x256xf32>
    %17 = arith.addf %10, %13 : vector<8x256xf32>
    %18 = arith.maximumf %11, %15 : vector<8x256xf32>
    %19 = arith.addf %12, %15 : vector<8x256xf32>
    %20 = vector.extract_strided_slice %3 {offsets = [16, 0], sizes = [8, 256], strides = [1, 1]} : vector<24x256xf32> to vector<8x256xf32>
    %c0_12 = arith.constant 0 : index
    %c16 = arith.constant 16 : index
    %c0_13 = arith.constant 0 : index
    %21 = vector.load %arg3[%c0_12, %c16, %c0_13] : memref<1x24x256xf32, #tpu.memory_space<vmem>>, vector<1x8x256xf32>
    %22 = vector.shape_cast %21 : vector<1x8x256xf32> to vector<8x256xf32>
    %23 = arith.maximumf %16, %20 : vector<8x256xf32>
    %24 = arith.addf %17, %20 : vector<8x256xf32>
    %25 = arith.maximumf %18, %22 : vector<8x256xf32>
    %26 = arith.addf %19, %22 : vector<8x256xf32>
    %27 = tpu.concatenate %23, %24 in 1 : vector<8x256xf32>, vector<8x256xf32> -> vector<8x512xf32>
    %28 = tpu.concatenate %25, %26 in 1 : vector<8x256xf32>, vector<8x256xf32> -> vector<8x512xf32>
    %29 = tpu.concatenate %27, %28 in 0 : vector<8x512xf32>, vector<8x512xf32> -> vector<16x512xf32>
    %30 = arith.truncf %29 : vector<16x512xf32> to vector<16x512xbf16>
    %c0_14 = arith.constant 0 : index
    %c0_15 = arith.constant 0 : index
    %31 = vector.load %arg5[%c0_14, %c0_15] : memref<512x256xbf16, #tpu.memory_space<vmem>>, vector<512x256xbf16>
    %cst_16 = arith.constant dense<0.000000e+00> : vector<16x256xf32>
    %32 = tpu.matmul %30, %31, %cst_16 {dimension_numbers = #tpu.dot_dimension_numbers<[1], [0], [0], [1], [0, 0, 1, 1], [], []>} : vector<16x512xbf16>, vector<512x256xbf16>, vector<16x256xf32> -> vector<16x256xf32>
    %c0_17 = arith.constant 0 : index
    %33 = memref.load %arg6[%c0_17] : memref<1xf32, #tpu.memory_space<smem>>
    %34 = vector.broadcast %33 : f32 to vector<16x256xf32>
    %35 = arith.addf %32, %34 : vector<16x256xf32>
    %36 = arith.negf %35 : vector<16x256xf32>
    %37 = math.exp %36 : vector<16x256xf32>
    %cst_18 = arith.constant 1.000000e+00 : f32
    %38 = vector.broadcast %cst_18 : f32 to vector<16x256xf32>
    %39 = arith.addf %38, %37 : vector<16x256xf32>
    %40 = arith.divf %38, %39 : vector<16x256xf32>
    %41 = vector.extract_strided_slice %40 {offsets = [0, 0], sizes = [8, 256], strides = [1, 1]} : vector<16x256xf32> to vector<8x256xf32>
    %42 = vector.extract_strided_slice %40 {offsets = [8, 0], sizes = [8, 256], strides = [1, 1]} : vector<16x256xf32> to vector<8x256xf32>
    %43 = arith.mulf %6, %41 : vector<8x256xf32>
    %44 = arith.mulf %8, %42 : vector<8x256xf32>
    %45 = arith.addf %43, %44 : vector<8x256xf32>
    %46 = arith.mulf %13, %41 : vector<8x256xf32>
    %47 = arith.mulf %15, %42 : vector<8x256xf32>
    %48 = arith.addf %46, %47 : vector<8x256xf32>
    %49 = arith.mulf %20, %41 : vector<8x256xf32>
    %50 = arith.mulf %22, %42 : vector<8x256xf32>
    %51 = arith.addf %49, %50 : vector<8x256xf32>
    %52 = tpu.concatenate %45, %48, %51 in 0 : vector<8x256xf32>, vector<8x256xf32>, vector<8x256xf32> -> vector<24x256xf32>
    %c0_19 = arith.constant 0 : index
    %c0_20 = arith.constant 0 : index
    %c0_21 = arith.constant 0 : index
    %53 = vector.load %arg7[%c0_19, %c0_20, %c0_21] : memref<1x24x256xf32, #tpu.memory_space<vmem>>, vector<1x24x256xf32>
    %54 = vector.shape_cast %53 : vector<1x24x256xf32> to vector<24x256xf32>
    %55 = vector.shape_cast %52 : vector<24x256xf32> to vector<1x24x256xf32>
    tpu.vector_store %arg7[%c0_19, %c0_20, %c0_21], %55 {strides = array<i32>} : memref<1x24x256xf32, #tpu.memory_space<vmem>>, vector<1x24x256xf32>,
    return
  }
  func.func @transform_0(%arg0: i32) -> (i32, i32, i32) {
    %c0_i32 = arith.constant 0 : i32
    %c0_i32_0 = arith.constant 0 : i32
    %c0_i32_1 = arith.constant 0 : i32
    return %arg0, %c0_i32, %c0_i32_0 : i32, i32, i32
  }
  func.func @transform_1(%arg0: i32) -> (i32, i32, i32) {
    %c0_i32 = arith.constant 0 : i32
    %c0_i32_0 = arith.constant 0 : i32
    %c0_i32_1 = arith.constant 0 : i32
    return %arg0, %c0_i32, %c0_i32_0 : i32, i32, i32
  }
  func.func @transform_2(%arg0: i32) -> (i32, i32, i32) {
    %c0_i32 = arith.constant 0 : i32
    %c0_i32_0 = arith.constant 0 : i32
    %c0_i32_1 = arith.constant 0 : i32
    return %arg0, %c0_i32, %c0_i32_0 : i32, i32, i32
  }
  func.func @transform_3(%arg0: i32) -> (i32, i32) {
    %c0_i32 = arith.constant 0 : i32
    %c0_i32_0 = arith.constant 0 : i32
    %c0_i32_1 = arith.constant 0 : i32
    return %c0_i32, %c0_i32_0 : i32, i32
  }
  func.func @transform_4(%arg0: i32) -> (i32, i32) {
    %c0_i32 = arith.constant 0 : i32
    %c0_i32_0 = arith.constant 0 : i32
    %c0_i32_1 = arith.constant 0 : i32
    return %c0_i32, %c0_i32_0 : i32, i32
  }
  func.func @transform_5(%arg0: i32) -> i32 {
    %c0_i32 = arith.constant 0 : i32
    %c0_i32_0 = arith.constant 0 : i32
    return %c0_i32 : i32
  }
  func.func @transform_6(%arg0: i32) -> (i32, i32, i32) {
    %c0_i32 = arith.constant 0 : i32
    %c0_i32_0 = arith.constant 0 : i32
    %c0_i32_1 = arith.constant 0 : i32
    return %arg0, %c0_i32, %c0_i32_0 : i32, i32, i32
  }
}

</mosaic_0001>

<bundles_post_ra>
// kernel: tpu_custom_call.1
= control target key start
LH: loop header
LB: loop body
LE: loop exit
PB: predicated region body
PF: predicated region fallthrough
CT: control target
= control target key end

     0   :  { %12 = vsyncpa [#allocation4], 0  ;;  %s1345_s0 = inlined_call_operand.hbm [shape: bf16[1,24,64], index: 0, kind: input, shape index: {}]   ;;  %s1346_s1 = inlined_call_operand.hbm [shape: f32[1,8,256], index: 1, kind: input, shape index: {}]   ;;  %s1347_s2 = inlined_call_operand.hbm [shape: f32[1,24,256], index: 2, kind: input, shape index: {}]   ;;  %s1348_s3 = inlined_call_operand.hbm [shape: bf16[64,256], index: 3, kind: input, shape index: {}]   ;;  %s1349_s4 = inlined_call_operand.hbm [shape: bf16[512,256], index: 4, kind: input, shape index: {}]   ;;  %s1350_s5 = inlined_call_operand.<no memory space> [shape: f32[1], index: 5, kind: input, shape index: {}]   ;;  %s1351_s6 = inlined_call_operand.hbm [shape: f32[1,24,256], index: 6, kind: output, shape index: {}]  }
   0x1   :  { %13 = vsyncpa [#allocation7], 0 }
   0x2   :  { %14 = vsyncpa [#allocation10], 0 }
   0x3   :  { %15 = vsyncpa [#allocation5], 0  ;;  %s1151_s21 = smov [#allocation6]   ;;  %s1152_s23 = smov [#allocation9]  }
   0x4   :  { %s34_s22 = sshll.u32 %s1151_s21, 4  ;;  %s55_s24 = sshll.u32 %s1152_s23, 4  ;;  %s35_s22 = int_to_ptr.vmem [resolvable:$true] %s34_s22  ;;  %s1199_s24 = int_to_ptr.vmem [resolvable:$true] %s55_s24 }
   0x5   :  { %s1011_s27 = scalar_lea.hbm %s1346_s1, 256 }
   0x6   :  { %p1012_p0 = scmp.ne.s32.totalorder %s1346_s1, %s1011_s27  ;;  %p1015_p1 = scmp.lt.u32.totalorder %s1011_s27, %s1346_s1 }
   0x8   :  { %p1017_p2 = pnand %p1015_p1, %p1012_p0 }
   0xa   :  { %1020 = shalt.err (!%p1017_p2)
}
   0xb   :  { %s1021_s8 = scalar_lea.vmem %s35_s22, 256  ;;  %p1026_p4 = scmp.lt.s32.totalorder %s35_s22, %s35_s22 }
   0xc   :  { %p1022_p3 = scmp.ne.s32.totalorder %s35_s22, %s1021_s8  ;;  %p1027_p5 = scmp.lt.s32.totalorder %s1021_s8, %s1021_s8 }
   0xe   :  { %p1028_p6 = por %p1027_p5, %p1026_p4 }
  0x10   :  { %p1029_p7 = pnand %p1028_p6, %p1022_p3 }
  0x12   :  { %1032 = shalt.err (!%p1029_p7)
}
  0x13   :  { %37 = dma.hbm_to_vmem [thread:$0]  %s1346_s1, 256, %s35_s22, [#allocation7]  }
  0x14   :  { %s1033_s13 = scalar_lea.hbm %s1348_s3, 1024 }
  0x15   :  { %p1034_p8 = scmp.ne.s32.totalorder %s1348_s3, %s1033_s13  ;;  %p1037_p9 = scmp.lt.u32.totalorder %s1033_s13, %s1348_s3 }
  0x17   :  { %p1039_p10 = pnand %p1037_p9, %p1034_p8 }
  0x19   :  { %1042 = shalt.err (!%p1039_p10)
}
  0x1a   :  { %s1043_s18 = scalar_lea.vmem %s1199_s24, 1024  ;;  %p1048_p12 = scmp.lt.s32.totalorder %s1199_s24, %s1199_s24 }
  0x1b   :  { %p1044_p11 = scmp.ne.s32.totalorder %s1199_s24, %s1043_s18  ;;  %p1049_p13 = scmp.lt.s32.totalorder %s1043_s18, %s1043_s18 }
  0x1d   :  { %p1050_p0 = por %p1049_p13, %p1048_p12 }
  0x1f   :  { %p1051_p1 = pnand %p1050_p0, %p1044_p11 }
  0x21   :  { %1054 = shalt.err (!%p1051_p1)
}
  0x22   :  { %s1153_s1 = smov 128   ;;  %s1154_s19 = smov 8  }
  0x23   :  { %61 = dma.hbm_to_vmem [thread:$0]  %s1348_s3, 1024, %s1199_s24, [#allocation10], %s1153_s1, %s1153_s1, %s1154_s19  }
  0x24   :  { %s1155_s22 = smov [#allocation3]   ;;  %s1055_s27 = scalar_lea.hbm %s1345_s0, 192 }
  0x25   :  { %s21_s23 = sshll.u32 %s1155_s22, 4  ;;  %p1056_p2 = scmp.ne.s32.totalorder %s1345_s0, %s1055_s27  ;;  %s22_s23 = int_to_ptr.vmem [resolvable:$true] %s21_s23 }
  0x26   :  { %p1059_p3 = scmp.lt.u32.totalorder %s1055_s27, %s1345_s0 }
  0x28   :  { %p1061_p4 = pnand %p1059_p3, %p1056_p2 }
  0x2a   :  { %1064 = shalt.err (!%p1061_p4)
}
  0x2b   :  { %s1065_s8 = scalar_lea.vmem %s22_s23, 192  ;;  %p1070_p6 = scmp.lt.s32.totalorder %s22_s23, %s22_s23 }
  0x2c   :  { %p1066_p5 = scmp.ne.s32.totalorder %s22_s23, %s1065_s8  ;;  %p1071_p7 = scmp.lt.s32.totalorder %s1065_s8, %s1065_s8 }
  0x2e   :  { %p1072_p8 = por %p1071_p7, %p1070_p6 }
  0x30   :  { %p1073_p9 = pnand %p1072_p8, %p1066_p5 }
  0x32   :  { %1076 = shalt.err (!%p1073_p9)
}
  0x33   :  { %s1156_s3 = smov 64   ;;  %s1157_s24 = smov 4  }
  0x34   :  { %27 = dma.hbm_to_vmem [thread:$0]  %s1345_s0, 192, %s22_s23, [#allocation4], %s1156_s3, %s1156_s3, %s1157_s24  }
  0x35   :  { %s1158_s11 = smov [#allocation8]   ;;  %s1077_s15 = scalar_lea.hbm %s1347_s2, 768 }
  0x36   :  { %s43_s12 = sshll.u32 %s1158_s11, 4  ;;  %p1078_p10 = scmp.ne.s32.totalorder %s1347_s2, %s1077_s15  ;;  %s44_s12 = int_to_ptr.vmem [resolvable:$true] %s43_s12 }
  0x37   :  { %p1081_p11 = scmp.lt.u32.totalorder %s1077_s15, %s1347_s2 }
  0x39   :  { %p1083_p12 = pnand %p1081_p11, %p1078_p10 }
  0x3b   :  { %1086 = shalt.err (!%p1083_p12)
}
  0x3c   :  { %s1087_s21 = scalar_lea.vmem %s44_s12, 768  ;;  %p1092_p0 = scmp.lt.s32.totalorder %s44_s12, %s44_s12 }
  0x3d   :  { %p1088_p13 = scmp.ne.s32.totalorder %s44_s12, %s1087_s21  ;;  %p1093_p1 = scmp.lt.s32.totalorder %s1087_s21, %s1087_s21 }
  0x3f   :  { %p1094_p2 = por %p1093_p1, %p1092_p0 }
  0x41   :  { %p1095_p3 = pnand %p1094_p2, %p1088_p13 }
  0x43   :  { %1098 = shalt.err (!%p1095_p3)
}
  0x44   :  { %s1159_s0 = smov 256   ;;  %s1160_s22 = smov 16  }
  0x45   :  { %49 = dma.hbm_to_vmem [thread:$0]  %s1347_s2, 768, %s44_s12, [#allocation7], %s1159_s0, %s1159_s0, %s1160_s22  }
  0x46   :  { %s1161_s26 = smov [#allocation11]   ;;  %s1099_s30 = scalar_lea.hbm %s1349_s4, 8192 }
  0x47   :  { %s67_s27 = sshll.u32 %s1161_s26, 4  ;;  %p1100_p4 = scmp.ne.s32.totalorder %s1349_s4, %s1099_s30  ;;  %s68_s27 = int_to_ptr.vmem [resolvable:$true] %s67_s27 }
  0x48   :  { %p1103_p5 = scmp.lt.u32.totalorder %s1099_s30, %s1349_s4 }
  0x4a   :  { %p1105_p6 = pnand %p1103_p5, %p1100_p4 }
  0x4c   :  { %1108 = shalt.err (!%p1105_p6)
}
  0x4d   :  { %s1109_s9 = scalar_lea.vmem %s68_s27, 8192  ;;  %p1114_p8 = scmp.lt.s32.totalorder %s68_s27, %s68_s27 }
  0x4e   :  { %p1110_p7 = scmp.ne.s32.totalorder %s68_s27, %s1109_s9  ;;  %p1115_p9 = scmp.lt.s32.totalorder %s1109_s9, %s1109_s9 }
  0x50   :  { %p1116_p10 = por %p1115_p9, %p1114_p8 }
  0x52   :  { %p1117_p11 = pnand %p1116_p10, %p1110_p7 }
  0x54   :  { %1120 = shalt.err (!%p1117_p11)
}
  0x55   :  { %73 = dma.hbm_to_vmem [thread:$0]  %s1349_s4, 8192, %s68_s27, [#allocation10], %s1153_s1, %s1153_s1, %s1154_s19  }
  0x56   :  { %1143 = dma.done.wait [#allocation4], 192  }
  0x57   :  { %1144 = vsyncadd [#allocation4], 4294967104 }
  0x58   :  { %1145 = dma.done.wait [#allocation7], 1024  }
  0x59   :  { %1146 = vsyncadd [#allocation7], 4294966272 }
  0x5a   :  { %1147 = dma.done.wait [#allocation10], 9216  }
  0x5b   :  { %1148 = vsyncadd [#allocation10], 4294958080  ;;  %v1162_v0 = vmov 0   ;;  %v885_v1 = vld [vmem:[#allocation9 + $0x4] ss:$8 sps:$4 sm:$0xff]   ;;  %v897_v14 = vld [vmem:[#allocation3] sm:$0xff]  }
  0x5c   :  { %190 = vmatprep.mubr.bf16.mxu0 %v1162_v0  ;;  %v887_v2 = vld [vmem:[#allocation9] ss:$8 sps:$4 sm:$0xff]   ;;  %158 = vmatprep.subr.bf16.mxu0 %v885_v1  ;;  %v888_v3 = vld [vmem:[#allocation9 + $0x14] ss:$8 sps:$4 sm:$0xff]   ;;  %v890_v4 = vld [vmem:[#allocation9 + $0x10] ss:$8 sps:$4 sm:$0xff]  }
  0x5d   :  { %159 = vmatpush1.bf16.msra.mxu0 %v887_v2  ;;  %v891_v5 = vld [vmem:[#allocation9 + $0x24] ss:$8 sps:$4 sm:$0xff]   ;;  %v893_v6 = vld [vmem:[#allocation9 + $0x20] ss:$8 sps:$4 sm:$0xff]   ;;  %v894_v7 = vld [vmem:[#allocation9 + $0x34] ss:$8 sps:$4 sm:$0xff]  }
  0x5e   :  { %160 = vmatprep.subr.bf16.mxu0 %v888_v3  ;;  %v902_v8 = vld [vmem:[#allocation11 + $0x104] ss:$8 sps:$4 sm:$0xff]   ;;  %v904_v9 = vld [vmem:[#allocation11 + $0x100] ss:$8 sps:$4 sm:$0xff]   ;;  %v896_v10 = vld [vmem:[#allocation9 + $0x30] ss:$8 sps:$4 sm:$0xff]  }
  0x5f   :  { %v901_v11 = vld [vmem:[#allocation11 + $0x4] ss:$8 sps:$4 sm:$0xff]   ;;  %674 = vmatprep.subr.bf16.mxu1 %v902_v8  ;;  %v908_v12 = vld [vmem:[#allocation11 + $0x114] ss:$8 sps:$4 sm:$0xff]   ;;  %v910_v13 = vld [vmem:[#allocation11 + $0x110] ss:$8 sps:$4 sm:$0xff]  }
  0x60   :  { %675 = vmatpush1.bf16.msra.mxu1 %v904_v9  ;;  %v899_v15 = vld [vmem:[#allocation11] ss:$8 sps:$4 sm:$0xff]   ;;  %v914_v16 = vld [vmem:[#allocation11 + $0x124] ss:$8 sps:$4 sm:$0xff]   ;;  %vm151_vm0 = vcmask 523264  }
  0x61   :  { %161 = vmatpush1.bf16.msra.mxu0 %v890_v4  ;;  %676 = vmatprep.subr.bf16.mxu1 %v908_v12  ;;  %v907_v17 = vld [vmem:[#allocation11 + $0x14] ss:$8 sps:$4 sm:$0xff]   ;;  %v916_v18 = vld [vmem:[#allocation11 + $0x120] ss:$8 sps:$4 sm:$0xff]   ;;  %v905_v20 = vld [vmem:[#allocation11 + $0x10] ss:$8 sps:$4 sm:$0xff]  }
  0x62   :  { %162 = vmatprep.subr.bf16.mxu0 %v891_v5  ;;  %v920_v19 = vld [vmem:[#allocation11 + $0x134] ss:$8 sps:$4 sm:$0xff]   ;;  %v913_v21 = vld [vmem:[#allocation11 + $0x24] ss:$8 sps:$4 sm:$0xff]   ;;  %v922_v22 = vld [vmem:[#allocation11 + $0x130] ss:$8 sps:$4 sm:$0xff]  }
  0x63   :  { %v926_v23 = vld [vmem:[#allocation11 + $0x144] ss:$8 sps:$4 sm:$0xff]   ;;  %v898_v24 = vld [vmem:[#allocation3 + $0x8] ss:$0 sps:$4 sm:$0xff]   ;;  %v911_v25 = vld [vmem:[#allocation11 + $0x20] ss:$8 sps:$4 sm:$0xff]  }
  0x64   :  { %677 = vmatpush1.bf16.msra.mxu1 %v910_v13  ;;  %v919_v26 = vld [vmem:[#allocation11 + $0x34] ss:$8 sps:$4 sm:$0xff]   ;;  %v928_v27 = vld [vmem:[#allocation11 + $0x140] ss:$8 sps:$4 sm:$0xff]   ;;  %v917_v29 = vld [vmem:[#allocation11 + $0x30] ss:$8 sps:$4 sm:$0xff]  }
  0x65   :  { %163 = vmatpush1.bf16.msra.mxu0 %v893_v6  ;;  %678 = vmatprep.subr.bf16.mxu1 %v914_v16  ;;  %v932_v28 = vld [vmem:[#allocation11 + $0x154] ss:$8 sps:$4 sm:$0xff]   ;;  %v925_v30 = vld [vmem:[#allocation11 + $0x44] ss:$8 sps:$4 sm:$0xff]   ;;  %v934_v31 = vld [vmem:[#allocation11 + $0x150] ss:$8 sps:$4 sm:$0xff]  }
  0x66   :  { %164 = vmatprep.subr.bf16.mxu0 %v894_v7  ;;  %v938_v32 = vld [vmem:[#allocation11 + $0x164] ss:$8 sps:$4 sm:$0xff]   ;;  %v923_v33 = vld [vmem:[#allocation11 + $0x40] ss:$8 sps:$4 sm:$0xff]   ;;  %v931_v34 = vld [vmem:[#allocation11 + $0x54] ss:$8 sps:$4 sm:$0xff]  }
  0x67   :  { %v940_v35 = vld [vmem:[#allocation11 + $0x160] ss:$8 sps:$4 sm:$0xff]   ;;  %v944_v36 = vld [vmem:[#allocation11 + $0x174] ss:$8 sps:$4 sm:$0xff]   ;;  %v929_v37 = vld [vmem:[#allocation11 + $0x50] ss:$8 sps:$4 sm:$0xff]  }
  0x68   :  { %679 = vmatpush1.bf16.msra.mxu1 %v916_v18  ;;  %v937_v38 = vld [vmem:[#allocation11 + $0x64] ss:$8 sps:$4 sm:$0xff]   ;;  %v946_v39 = vld [vmem:[#allocation11 + $0x170] ss:$8 sps:$4 sm:$0xff]   ;;  %v935_v41 = vld [vmem:[#allocation11 + $0x60] ss:$8 sps:$4 sm:$0xff]  }
  0x69   :  { %165 = vmatpush1.bf16.msra.mxu0 %v896_v10  ;;  %680 = vmatprep.subr.bf16.mxu1 %v920_v19  ;;  %v950_v40 = vld [vmem:[#allocation11 + $0x184] ss:$8 sps:$4 sm:$0xff]   ;;  %v943_v42 = vld [vmem:[#allocation11 + $0x74] ss:$8 sps:$4 sm:$0xff]   ;;  %v952_v43 = vld [vmem:[#allocation11 + $0x180] ss:$8 sps:$4 sm:$0xff]  }
  0x6a   :  { %631 = vmatprep.subr.bf16.mxu0 %v901_v11  ;;  %v941_v44 = vld [vmem:[#allocation11 + $0x70] ss:$8 sps:$4 sm:$0xff]   ;;  %v956_v45 = vld [vmem:[#allocation11 + $0x194] ss:$8 sps:$4 sm:$0xff]   ;;  %v949_v46 = vld [vmem:[#allocation11 + $0x84] ss:$8 sps:$4 sm:$0xff]  }
  0x6b   :  { %v958_v47 = vld [vmem:[#allocation11 + $0x190] ss:$8 sps:$4 sm:$0xff]   ;;  %v962_v48 = vld [vmem:[#allocation11 + $0x1a4] ss:$8 sps:$4 sm:$0xff]   ;;  %v947_v49 = vld [vmem:[#allocation11 + $0x80] ss:$8 sps:$4 sm:$0xff]  }
  0x6c   :  { %794 = vmatmul.mubr.msk.bf16.vlgmr.msra.gmra.mrb[0].mxu0 %vm151_vm0, %v897_v14  ;;  %681 = vmatpush1.bf16.msra.mxu1 %v922_v22  ;;  %v955_v50 = vld [vmem:[#allocation11 + $0x94] ss:$8 sps:$4 sm:$0xff]   ;;  %v964_v51 = vld [vmem:[#allocation11 + $0x1a0] ss:$8 sps:$4 sm:$0xff]   ;;  %v953_v53 = vld [vmem:[#allocation11 + $0x90] ss:$8 sps:$4 sm:$0xff]  }
  0x6d   :  { %200 = vmatprep.mubr.bf16.mxu0 %v1162_v0  ;;  %632 = vmatpush1.bf16.msra.mxu0 %v899_v15  ;;  %v968_v52 = vld [vmem:[#allocation11 + $0x1b4] ss:$8 sps:$4 sm:$0xff]   ;;  %v961_v54 = vld [vmem:[#allocation11 + $0xa4] ss:$8 sps:$4 sm:$0xff]   ;;  %v970_v55 = vld [vmem:[#allocation11 + $0x1b0] ss:$8 sps:$4 sm:$0xff]  }
  0x6e   :  { %633 = vmatprep.subr.bf16.mxu0 %v907_v17  ;;  %682 = vmatprep.subr.bf16.mxu1 %v926_v23  ;;  %v974_v56 = vld [vmem:[#allocation11 + $0x1c4] ss:$8 sps:$4 sm:$0xff]   ;;  %v959_v57 = vld [vmem:[#allocation11 + $0xa0] ss:$8 sps:$4 sm:$0xff]   ;;  %v967_v58 = vld [vmem:[#allocation11 + $0xb4] ss:$8 sps:$4 sm:$0xff]  }
  0x6f   :  { %v965_v59 = vld [vmem:[#allocation11 + $0xb0] ss:$8 sps:$4 sm:$0xff]   ;;  %v973_v60 = vld [vmem:[#allocation11 + $0xc4] ss:$8 sps:$4 sm:$0xff]   ;;  %v971_v61 = vld [vmem:[#allocation11 + $0xc0] ss:$8 sps:$4 sm:$0xff]  }
  0x70   :  { %683 = vmatpush1.bf16.msra.mxu1 %v928_v27  ;;  %v976_v62 = vld [vmem:[#allocation11 + $0x1c0] ss:$8 sps:$4 sm:$0xff]   ;;  %v979_v63 = vld [vmem:[#allocation11 + $0xd4] ss:$8 sps:$4 sm:$0xff]   ;;  %v977_v1 = vld [vmem:[#allocation11 + $0xd0] ss:$8 sps:$4 sm:$0xff]  }
  0x71   :  { %634 = vmatpush1.bf16.msra.mxu0 %v905_v20  ;;  %684 = vmatprep.subr.bf16.mxu1 %v932_v28  ;;  %v980_v0 = vld [vmem:[#allocation11 + $0x1d4] ss:$8 sps:$4 sm:$0xff]   ;;  %v982_v2 = vld [vmem:[#allocation11 + $0x1d0] ss:$8 sps:$4 sm:$0xff]   ;;  %v983_v3 = vld [vmem:[#allocation11 + $0xe0] ss:$8 sps:$4 sm:$0xff]  }
  0x72   :  { %635 = vmatprep.subr.bf16.mxu0 %v913_v21  ;;  %v985_v4 = vld [vmem:[#allocation11 + $0xe4] ss:$8 sps:$4 sm:$0xff]   ;;  %v988_v6 = vld [vmem:[#allocation11 + $0x1e0] ss:$8 sps:$4 sm:$0xff]   ;;  %v991_v7 = vld [vmem:[#allocation11 + $0xf4] ss:$8 sps:$4 sm:$0xff]  }
  0x73   :  { %v986_v5 = vld [vmem:[#allocation11 + $0x1e4] ss:$8 sps:$4 sm:$0xff]   ;;  %v992_v8 = vld [vmem:[#allocation11 + $0x1f4] ss:$8 sps:$4 sm:$0xff]   ;;  %v989_v9 = vld [vmem:[#allocation11 + $0xf0] ss:$8 sps:$4 sm:$0xff]  }
  0x74   :  { %795 = vmatmul.mubr.msk.bf16.gmra.mrb[4].mxu0 %vm151_vm0, %v898_v24  ;;  %685 = vmatpush1.bf16.msra.mxu1 %v934_v31  ;;  %v994_v10 = vld [vmem:[#allocation11 + $0x1f0] ss:$8 sps:$4 sm:$0xff]   ;;  %v209_v12 = vld [vmem:[#allocation6] sm:$0xff]  ;;  %v210_v14 = vld [vmem:[#allocation6 + $0x8] sm:$0xff] }
  0x75   :  { %636 = vmatpush1.bf16.msra.mxu0 %v911_v25  ;;  %686 = vmatprep.subr.bf16.mxu1 %v938_v32  ;;  %v1277_v11 = vld [vmem:[#allocation8 + $0x8] sm:$0xff]  ;;  %v1279_v13 = vld [vmem:[#allocation8] sm:$0xff]  ;;  %v1290_v22 = vld [vmem:[#allocation8 + $0x18] sm:$0xff] }
  0x76   :  { %637 = vmatprep.subr.bf16.mxu0 %v919_v26  ;;  %v218_v16 = vmax.f32 %v210_v14, %v1277_v11  ;;  %v220_v17 = vadd.f32 %v1277_v11, %v210_v14  ;;  %v217_v21 = vmax.f32 %v209_v12, %v1279_v13  ;;  %v219_v23 = vadd.f32 %v1279_v13, %v209_v12  ;;  %v1297_v27 = vld [vmem:[#allocation8 + $0x10] sm:$0xff] }
  0x78   :  { %687 = vmatpush1.bf16.msra.mxu1 %v940_v35  ;;  %v227_v35 = vmax.f32 %v217_v21, %v1297_v27 }
  0x79   :  { %638 = vmatpush1.bf16.msra.mxu0 %v917_v29  ;;  %688 = vmatprep.subr.bf16.mxu1 %v944_v36  ;;  %v1308_v36 = vld [vmem:[#allocation8 + $0x28] sm:$0xff] }
  0x7a   :  { %639 = vmatprep.subr.bf16.mxu0 %v925_v30 }
  0x7c   :  { %689 = vmatpush1.bf16.msra.mxu1 %v946_v39 }
  0x7d   :  { %640 = vmatpush1.bf16.msra.mxu0 %v923_v33  ;;  %690 = vmatprep.subr.bf16.mxu1 %v950_v40  ;;  %v228_v33 = vmax.f32 %v218_v16, %v1290_v22 }
  0x7e   :  { %641 = vmatprep.subr.bf16.mxu0 %v931_v34  ;;  %v230_v34 = vadd.f32 %v1290_v22, %v220_v17 }
  0x7f   :  { %v238_v40 = vmax.f32 %v228_v33, %v1308_v36 }
  0x80   :  { %691 = vmatpush1.bf16.msra.mxu1 %v952_v43 }
  0x81   :  { %642 = vmatpush1.bf16.msra.mxu0 %v929_v37  ;;  %692 = vmatprep.subr.bf16.mxu1 %v956_v45  ;;  %v229_v37 = vadd.f32 %v1297_v27, %v219_v23 }
  0x82   :  { %643 = vmatprep.subr.bf16.mxu0 %v937_v38  ;;  %v1311_v38 = vld [vmem:[#allocation8 + $0x20] sm:$0xff] }
  0x84   :  { %693 = vmatpush1.bf16.msra.mxu1 %v958_v47 }
  0x85   :  { %644 = vmatpush1.bf16.msra.mxu0 %v935_v41  ;;  %694 = vmatprep.subr.bf16.mxu1 %v962_v48  ;;  %v240_v41 = vadd.f32 %v1308_v36, %v230_v34 }
  0x86   :  { %645 = vmatprep.subr.bf16.mxu0 %v943_v42 }
  0x88   :  { %695 = vmatpush1.bf16.msra.mxu1 %v964_v51 }
  0x89   :  { %646 = vmatpush1.bf16.msra.mxu0 %v941_v44  ;;  %696 = vmatprep.subr.bf16.mxu1 %v968_v52  ;;  %v237_v44 = vmax.f32 %v227_v35, %v1311_v38 }
  0x8a   :  { %647 = vmatprep.subr.bf16.mxu0 %v949_v46  ;;  %v239_v46 = vadd.f32 %v1311_v38, %v229_v37 }
  0x8c   :  { %697 = vmatpush1.bf16.msra.mxu1 %v970_v55  ;;  %v310_v55 = vstv %s1350_s5  ;;  %s1163_s5 = smov [#allocation12]  }
  0x8d   :  { %648 = vmatpush1.bf16.msra.mxu0 %v947_v49  ;;  %698 = vmatprep.subr.bf16.mxu1 %v974_v56  ;;  %s770_s19 = sshll.u32 %s1163_s5, 4  ;;  %s771_s19 = int_to_ptr.vmem [resolvable:$true] %s770_s19 }
  0x8e   :  { %649 = vmatprep.subr.bf16.mxu0 %v955_v50  ;;  %s1121_s11 = scalar_lea.vmem %s771_s19, 768  ;;  %p1126_p13 = scmp.lt.s32.totalorder %s771_s19, %s771_s19 }
  0x8f   :  { %p1122_p12 = scmp.ne.s32.totalorder %s771_s19, %s1121_s11  ;;  %p1127_p0 = scmp.lt.s32.totalorder %s1121_s11, %s1121_s11 }
  0x90   :  { %699 = vmatpush1.bf16.msra.mxu1 %v976_v62 }
  0x91   :  { %650 = vmatpush1.bf16.msra.mxu0 %v953_v53  ;;  %700 = vmatprep.subr.bf16.mxu1 %v980_v0  ;;  %p1128_p1 = por %p1127_p0, %p1126_p13 }
  0x92   :  { %651 = vmatprep.subr.bf16.mxu0 %v961_v54 }
  0x93   :  { %p1129_p2 = pnand %p1128_p1, %p1122_p12 }
  0x94   :  { %701 = vmatpush1.bf16.msra.mxu1 %v982_v2 }
  0x95   :  { %652 = vmatpush1.bf16.msra.mxu0 %v959_v57  ;;  %702 = vmatprep.subr.bf16.mxu1 %v986_v5 }
  0x96   :  { %653 = vmatprep.subr.bf16.mxu0 %v967_v58 }
  0x98   :  { %703 = vmatpush1.bf16.msra.mxu1 %v988_v6 }
  0x99   :  { %654 = vmatpush1.bf16.msra.mxu0 %v965_v59  ;;  %704 = vmatprep.subr.bf16.mxu1 %v992_v8 }
  0x9a   :  { %655 = vmatprep.subr.bf16.mxu0 %v973_v60 }
  0x9c   :  { %705 = vmatpush1.bf16.msra.mxu1 %v994_v10 }
  0x9d   :  { %656 = vmatpush1.bf16.msra.mxu0 %v971_v61 }
  0x9e   :  { %657 = vmatprep.subr.bf16.mxu0 %v979_v63 }
  0xa1   :  { %658 = vmatpush1.bf16.msra.mxu0 %v977_v1 }
  0xa2   :  { %659 = vmatprep.subr.bf16.mxu0 %v985_v4 }
  0xa5   :  { %660 = vmatpush1.bf16.msra.mxu0 %v983_v3 }
  0xa6   :  { %661 = vmatprep.subr.bf16.mxu0 %v991_v7 }
  0xa9   :  { %662 = vmatpush1.bf16.msra.mxu0 %v989_v9 }
 0x13f   :  { %v1281_v15 = vpop.f32.mrb[0].mxu0 }
 0x140   :  { %v213_v18 = vmax.f32 %v209_v12, %v1281_v15  ;;  %v215_v19 = vadd.f32 %v209_v12, %v1281_v15  ;;  %v1287_v20 = vpop.f32.mrb[1].mxu0 }
 0x141   :  { %v214_v24 = vmax.f32 %v210_v14, %v1287_v20  ;;  %v216_v25 = vadd.f32 %v210_v14, %v1287_v20  ;;  %v1295_v26 = vpop.f32.mrb[2].mxu0 }
 0x142   :  { %v223_v28 = vmax.f32 %v213_v18, %v1295_v26  ;;  %v225_v29 = vadd.f32 %v215_v19, %v1295_v26  ;;  %v1301_v30 = vpop.f32.mrb[3].mxu0 }
 0x143   :  { %v224_v31 = vmax.f32 %v214_v24, %v1301_v30  ;;  %v226_v32 = vadd.f32 %v216_v25, %v1301_v30 }
 0x147   :  { %v202_v39 = vpop.f32.mrb[4].mxu0 }
 0x148   :  { %v233_v42 = vmax.f32 %v223_v28, %v202_v39  ;;  %v235_v43 = vadd.f32 %v225_v29, %v202_v39  ;;  %v204_v45 = vpop.f32.mrb[5].mxu0 }
 0x149   :  { %v234_v47 = vmax.f32 %v224_v31, %v204_v45  ;;  %v206_v48 = vpop.f32.mrb[6].mxu0  ;;  %v236_v49 = vadd.f32 %v226_v32, %v204_v45 }
 0x14a   :  { %v207_v50 = vpop.f32.mrb[7].mxu0  ;;  %v241_v53 = vpack.c.bf16 %v237_v44, %v233_v42  ;;  %v243_v54 = vpack.c.bf16 %v239_v46, %v235_v43 }
 0x14b   :  { %v242_v51 = vpack.c.bf16 %v238_v40, %v234_v47  ;;  %v244_v52 = vpack.c.bf16 %v240_v41, %v236_v49 }
 0x14d   :  { %663 = vmatprep.mubr.bf16.mxu0 %v242_v51  ;;  %706 = vmatprep.mubr.bf16.mxu1 %v244_v52 }
 0x14e   :  { %664 = vmatmul.mubr.bf16.vlgmr.msra.gmra.mrb[8].mxu0 %v241_v53  ;;  %707 = vmatmul.mubr.bf16.vlgmr.msra.gmra.mrb[0].mxu1 %v243_v54 }
 0x221   :  { %v665_v56 = vpop.f32.mrb[8].mxu0  ;;  %v708_v57 = vpop.f32.mrb[0].mxu1 }
 0x222   :  { %v666_v58 = vadd.f32 %v665_v56, %v310_v55  ;;  %v667_v59 = vpop.f32.mrb[9].mxu0  ;;  %v710_v60 = vpop.f32.mrb[1].mxu1 }
 0x223   :  { %v668_v61 = vadd.f32 %v667_v59, %v310_v55  ;;  %v669_v62 = vpop.f32.mrb[10].mxu0  ;;  %v712_v63 = vpop.f32.mrb[2].mxu1 }
 0x224   :  { %v709_v0 = vadd.f32 %v708_v57, %v666_v58  ;;  %v670_v1 = vadd.f32 %v669_v62, %v310_v55  ;;  %v671_v2 = vpop.f32.mrb[11].mxu0  ;;  %v714_v3 = vpop.f32.mrb[3].mxu1 }
 0x225   :  { %v711_v4 = vadd.f32 %v710_v60, %v668_v61  ;;  %v672_v5 = vadd.f32 %v671_v2, %v310_v55 }
 0x226   :  { %v860_v6 = vmul.f32 -1.442695, %v709_v0  ;;  %v713_v7 = vadd.f32 %v712_v63, %v670_v1 }
 0x227   :  { %v861_v8 = vmul.f32 -1.442695, %v711_v4  ;;  %v715_v9 = vadd.f32 %v714_v3, %v672_v5 }
 0x228   :  { %995 = vpow2.f32 %v860_v6  ;;  %v862_v10 = vmul.f32 -1.442695, %v713_v7 }
 0x229   :  { %997 = vpow2.f32 %v861_v8  ;;  %v863_v12 = vmul.f32 -1.442695, %v715_v9 }
 0x22a   :  { %999 = vpow2.f32 %v862_v10 }
 0x22b   :  { %1001 = vpow2.f32 %v863_v12 }
 0x232   :  { %v996_v14 = vpop.eup %995 }
 0x233   :  { %v998_v16 = vpop.eup %997  ;;  %v729_v17 = vadd.f32 1.0, %v996_v14 }
 0x234   :  { %v1000_v18 = vpop.eup %999  ;;  %v730_v19 = vadd.f32 1.0, %v998_v16 }
 0x235   :  { %v1002_v21 = vpop.eup %1001  ;;  %1003 = vrcp.f32 %v729_v17  ;;  %v731_v23 = vadd.f32 1.0, %v1000_v18 }
 0x236   :  { %1005 = vrcp.f32 %v730_v19  ;;  %v732_v24 = vadd.f32 1.0, %v1002_v21 }
 0x237   :  { %1007 = vrcp.f32 %v731_v23 }
 0x238   :  { %1009 = vrcp.f32 %v732_v24 }
 0x23f   :  { %v1004_v25 = vpop.eup %1003 }
 0x240   :  { %v1006_v28 = vpop.eup %1005  ;;  %v741_v29 = vmul.f32 %v1004_v25, %v1281_v15  ;;  %v747_v31 = vmul.f32 %v1004_v25, %v1295_v26  ;;  %v753_v32 = vmul.f32 %v1004_v25, %v202_v39 }
 0x241   :  { %v1008_v33 = vpop.eup %1007  ;;  %v742_v34 = vmul.f32 %v1006_v28, %v1287_v20  ;;  %v748_v35 = vmul.f32 %v1006_v28, %v1301_v30  ;;  %v754_v37 = vmul.f32 %v1006_v28, %v204_v45 }
 0x242   :  { %v1010_v40 = vpop.eup %1009  ;;  %v743_v41 = vmul.f32 %v1008_v33, %v1279_v13  ;;  %v749_v42 = vmul.f32 %v1008_v33, %v1297_v27  ;;  %v755_v43 = vmul.f32 %v1008_v33, %v1311_v38 }
 0x243   :  { %v744_v15 = vmul.f32 %v1010_v40, %v1277_v11  ;;  %v750_v26 = vmul.f32 %v1010_v40, %v1290_v22  ;;  %v756_v39 = vmul.f32 %v1010_v40, %v1308_v36 }
 0x244   :  { %v745_v44 = vadd.f32 %v743_v41, %v741_v29  ;;  %v751_v20 = vadd.f32 %v749_v42, %v747_v31  ;;  %v757_v46 = vadd.f32 %v755_v43, %v753_v32 }
 0x245   :  { %v746_v30 = vadd.f32 %v744_v15, %v742_v34  ;;  %v752_v45 = vadd.f32 %v750_v26, %v748_v35  ;;  %v758_v47 = vadd.f32 %v756_v39, %v754_v37 }
 0x246   :  { %759 = vst [vmem:[#allocation12] sm:$0xff] %v745_v44  ;;  %761 = vst [vmem:[#allocation12 + $0x10] sm:$0xff] %v751_v20 }
 0x247   :  { %763 = vst [vmem:[#allocation12 + $0x20] sm:$0xff] %v757_v46  ;;  %760 = vst [vmem:[#allocation12 + $0x8] sm:$0xff] %v746_v30 }
 0x248   :  { %762 = vst [vmem:[#allocation12 + $0x18] sm:$0xff] %v752_v45  ;;  %764 = vst [vmem:[#allocation12 + $0x28] sm:$0xff] %v758_v47 }
 0x249   :  { %1132 = shalt.err (!%p1129_p2)
}
 0x24a   :  { %s1133_s14 = scalar_lea.hbm %s1351_s6, 768 }
 0x24b   :  { %p1134_p3 = scmp.ne.s32.totalorder %s1351_s6, %s1133_s14  ;;  %p1137_p4 = scmp.lt.u32.totalorder %s1133_s14, %s1351_s6 }
 0x24d   :  { %p1139_p5 = pnand %p1137_p4, %p1134_p3 }
 0x24f   :  { %1142 = shalt.err (!%p1139_p5)
}
 0x250   :  { %776 = dma.vmem_to_hbm [thread:$0]  %s771_s19, 768, %s1351_s6, [#allocation5], %s1159_s0, %s1159_s0, %s1160_s22  }
 0x251   :  { %1149 = dma.done.wait [#allocation5], 768  }
 0x252   :  { %1150 = vsyncadd [#allocation5], 4294966528 }
 0x253   :  { %780 = vsyncpa [#allocation4], 1 }
 0x254   :  { %781 = vsyncpa [#allocation7], 1 }
 0x255   :  { %782 = vsyncpa [#allocation10], 1 }
 0x256   :  { %783 = vsyncpa [#allocation5], 1 }

</bundles_post_ra>
